<compile_context>
chip_gen: v7x
topology: tpu7x:2x2x1
jax: 0.10.0
libtpu: 0.0.40
codegen_flags: <defaults>
</compile_context>

<pallas_src>
import math
import functools

import jax
import jax.numpy as jnp
from jax import lax
from jax.experimental import pallas as pl
from jax.experimental.pallas import tpu as pltpu


# Matmul (MXU) operand dtype.  bf16 inputs + f32 accumulation is 2-4x faster
# on the MXU; set to jnp.float32 to recover exact-f32 numerics.
MATMUL_DTYPE = jnp.bfloat16

_MIB = 1024 * 1024


# ----------------------------------------------------------------------------
# Tiling / VMEM helpers
# ----------------------------------------------------------------------------
def _vmem_limit_bytes():
    """Scoped-VMEM limit: ~75% of physical VMEM (96 MiB on v5e/v6e's 128 MiB,
    48 MiB on v7x's 64 MiB)."""
    try:
        phys = int(pltpu.get_tpu_info().vmem_capacity_bytes)
    except Exception:  # interpret mode / older jax: conservative (v7x-safe)
        phys = 64 * _MIB
    return max(32 * _MIB, int(phys * 3 // 4))


def _round_up(n, m):
    return ((n + m - 1) // m) * m


def _pick_divisor(n, target, aligns=(128, 16, 8)):
    """Largest divisor of n <= target aligned to one of `aligns`; fallback n."""
    if n <= target:
        return n
    for align in aligns:
        start = target - target % align
        for d in range(start, 0, -align):
            if n % d == 0:
                return d
    return n


def _proj_tiles(M, K, N, vmem_limit):
    """(row tile, contraction tile) for the projection matmuls, sized so the
    weight block, accumulator and double-buffered blocks fit the budget."""
    budget = int(vmem_limit * 0.7)
    # weight block (tk, N) bf16, double-buffered: cap at ~30% of the budget.
    tk_cap = max(128, (budget * 3 // 10) // max(4 * N, 1))
    tk = _pick_divisor(K, tk_cap)
    w_bytes = 2 * tk * N * 2
    # per output-row bytes: f32 acc + bf16 outputs (2 buffers) + bf16 x block.
    row_bytes = 4 * N + 4 * N + 4 * tk
    tm = max(8, min(512, (budget - w_bytes) // max(row_bytes, 1)))
    tm -= tm % 8
    if tm >= 128:
        tm -= tm % 128
    if M <= tm:
        tm = _round_up(M, 8)
    return tm, tk


def _attention_tile(sq, sk, heads_per_block, e_block, out_bytes, vmem_limit):
    """q-tile height from actual residents: K block (2 buffers), q block
    (2 buffers), output block (2 buffers), in-kernel f32 temporaries."""
    budget = int(vmem_limit * 0.7)
    k_resident = 2 * sk * e_block * 2                     # K block, bf16, x2 buf
    per_row = (2 * e_block * 2                            # q block, bf16, x2 buf
               + 2 * heads_per_block * sk * out_bytes     # out block, x2 buf
               + 6 * sk * 4)                              # sparsemax f32 temps
    tq = (budget - k_resident) // max(per_row, 1)
    tq = max(8, min(512, tq))
    tq -= tq % 8
    if tq >= 128:
        tq -= tq % 128                                    # MXU-friendly heights
    if sq <= tq:
        tq = _round_up(sq, 8)
    return tq


# ----------------------------------------------------------------------------
# Kernel 1: fused, tiled Q/K projection   [k | q] = x @ [W_k^T | s*W_q^T]
# (contraction-axis grid + f32 accumulator so the weight never has to be
#  fully resident — required for v7x at large embed dims)
# ----------------------------------------------------------------------------
def _fused_qk_proj_kernel(x_ref, w_ref, k_ref, q_ref, acc_ref, *, embed_dim):
    @pl.when(pl.program_id(1) == 0)
    def _():
        acc_ref[...] = jnp.zeros_like(acc_ref)

    acc_ref[...] += jnp.dot(x_ref[...], w_ref[...],
                            preferred_element_type=jnp.float32)

    @pl.when(pl.program_id(1) == pl.num_programs(1) - 1)
    def _():
        acc = acc_ref[...]
        k_ref[...] = acc[:, :embed_dim].astype(k_ref.dtype)
        q_ref[...] = acc[:, embed_dim:].astype(q_ref.dtype)


def fused_qk_projection(x2d, w_cat_t, embed_dim, vmem_limit):
    """x2d: (M, E), w_cat_t: (E, 2E) = [W_k^T | scale*W_q^T].
    Returns (k_proj, q_proj), each (M, E); x is read from HBM exactly once."""
    M, K = x2d.shape
    N = w_cat_t.shape[1]
    tm, tk = _proj_tiles(M, K, N, vmem_limit)
    M_pad = _round_up(M, tm)
    if M_pad != M:
        x2d = jnp.pad(x2d, ((0, M_pad - M), (0, 0)))
    out = jax.ShapeDtypeStruct((M_pad, embed_dim), MATMUL_DTYPE)
    k2d, q2d = pl.pallas_call(
        functools.partial(_fused_qk_proj_kernel, embed_dim=embed_dim),
        out_shape=(out, out),
        grid=(M_pad // tm, K // tk),
        in_specs=[pl.BlockSpec((tm, tk), lambda i, k: (i, k)),
                  pl.BlockSpec((tk, N), lambda i, k: (k, 0))],
        out_specs=(pl.BlockSpec((tm, embed_dim), lambda i, k: (i, 0)),
                   pl.BlockSpec((tm, embed_dim), lambda i, k: (i, 0))),
        scratch_shapes=[pltpu.VMEM((tm, N), jnp.float32)],
        compiler_params=pltpu.CompilerParams(
            dimension_semantics=("parallel", "arbitrary"),
            vmem_limit_bytes=vmem_limit),
    )(x2d, w_cat_t)
    if M_pad != M:
        k2d, q2d = k2d[:M], q2d[:M]
    return k2d, q2d


def _linear_kernel(x_ref, w_ref, o_ref, acc_ref):
    @pl.when(pl.program_id(1) == 0)
    def _():
        acc_ref[...] = jnp.zeros_like(acc_ref)
    acc_ref[...] += jnp.dot(x_ref[...], w_ref[...],
                            preferred_element_type=jnp.float32)

    @pl.when(pl.program_id(1) == pl.num_programs(1) - 1)
    def _():
        o_ref[...] = acc_ref[...].astype(o_ref.dtype)


def linear_nobias(x2d, w_t, vmem_limit):
    """Tiled y = x @ w_t (PyTorch F.linear without bias), row + K grid."""
    M, K = x2d.shape
    N = w_t.shape[1]
    tm, tk = _proj_tiles(M, K, N, vmem_limit)
    M_pad = _round_up(M, tm)
    if M_pad != M:
        x2d = jnp.pad(x2d, ((0, M_pad - M), (0, 0)))
    y = pl.pallas_call(
        _linear_kernel,
        out_shape=jax.ShapeDtypeStruct((M_pad, N), MATMUL_DTYPE),
        grid=(M_pad // tm, K // tk),
        in_specs=[pl.BlockSpec((tm, tk), lambda i, k: (i, k)),
                  pl.BlockSpec((tk, N), lambda i, k: (k, 0))],
        out_specs=pl.BlockSpec((tm, N), lambda i, k: (i, 0)),
        scratch_shapes=[pltpu.VMEM((tm, N), jnp.float32)],
        compiler_params=pltpu.CompilerParams(
            dimension_semantics=("parallel", "arbitrary"),
            vmem_limit_bytes=vmem_limit),
    )(x2d, w_t)
    return y[:M] if M_pad != M else y


# ----------------------------------------------------------------------------
# Kernel 2: sparsemax attention (tau-bisection + exact refine)
# ----------------------------------------------------------------------------
def _sparsemax_rows(logits):
    """Row-wise sparsemax of a (tq, sk) f32 tile.

    tau is bracketed in [max(z)-1, max(z)] and bisected 30 times (monotone
    f(tau) = sum(max(z - tau, 0)) - 1), then refined exactly from the
    identified support so rows sum to 1 to f32 accuracy.  O(Sk) per row per
    iteration instead of the O(Sk^2) pairwise-rank formulation.
    """
    z = logits - jnp.max(logits, axis=-1, keepdims=True)   # row max -> 0
    rows = z.shape[0]
    lo = jnp.full((rows, 1), -1.0, jnp.float32)             # f(lo) >= 0
    hi = jnp.zeros((rows, 1), jnp.float32)                  # f(hi) = -1 < 0

    def body(_, carry):
        lo, hi = carry
        mid = 0.5 * (lo + hi)
        f = jnp.sum(jnp.maximum(z - mid, 0.0), axis=-1, keepdims=True) - 1.0
        pos = f > 0.0
        return jnp.where(pos, mid, lo), jnp.where(pos, hi, mid)

    lo, hi = lax.fori_loop(0, 30, body, (lo, hi), unroll=2)
    tau0 = 0.5 * (lo + hi)                                   # always < 0
    support = z > tau0                                       # row max always in
    k = jnp.sum(support.astype(jnp.float32), axis=-1, keepdims=True)
    s = jnp.sum(jnp.where(support, z, 0.0), axis=-1, keepdims=True)
    tau = (s - 1.0) / k                                      # exact tau
    return jnp.maximum(z - tau, 0.0)


def _attn_kernel_all_heads(q_ref, k_ref, o_ref, *, num_heads, proj_dim):
    # Heads statically unrolled over static column slices of the full-E block.
    # The QK^T contraction uses the standard attention orientation (dim 1 of
    # K), same as the reference flash kernels.
    q = q_ref[0]   # (tq, E) bf16
    k = k_ref[0]   # (sk, E) bf16 — resident across the q-tile grid axis
    for h in range(num_heads):
        lo = h * proj_dim
        logits = lax.dot_general(
            q[:, lo:lo + proj_dim], k[:, lo:lo + proj_dim],
            dimension_numbers=(((1,), (1,)), ((), ())),
            preferred_element_type=jnp.float32)
        o_ref[0, h] = _sparsemax_rows(logits).astype(o_ref.dtype)


def _attn_kernel_one_head(q_ref, k_ref, o_ref):
    logits = lax.dot_general(
        q_ref[0], k_ref[0],
        dimension_numbers=(((1,), (1,)), ((), ())),
        preferred_element_type=jnp.float32)
    o_ref[0, 0] = _sparsemax_rows(logits).astype(o_ref.dtype)


def sparse_attention(q_proj, k_proj, num_heads, proj_dim, vmem_limit,
                     out_dtype=jnp.float32):
    """q_proj: (B, Sq, E), k_proj: (B, Sk, E) -> attn weights (B, H, Sq, Sk)."""
    B, Sq, E = q_proj.shape
    Sk = k_proj.shape[1]
    out_bytes = jnp.dtype(out_dtype).itemsize
    # Heads go into the grid when their column block is a legal (128-aligned)
    # BlockSpec dim: smaller output block, more parallel grid points (v7x).
    per_head_grid = (num_heads > 1) and (proj_dim % 128 == 0)

    if per_head_grid:
        tq = _attention_tile(Sq, Sk, 1, proj_dim, out_bytes, vmem_limit)
    else:
        tq = _attention_tile(Sq, Sk, num_heads, E, out_bytes, vmem_limit)

    Sq_pad = _round_up(Sq, tq)
    if Sq_pad != Sq:
        q_proj = jnp.pad(q_proj, ((0, 0), (0, Sq_pad - Sq), (0, 0)))

    if per_head_grid:
        out = pl.pallas_call(
            _attn_kernel_one_head,
            out_shape=jax.ShapeDtypeStruct((B, num_heads, Sq_pad, Sk), out_dtype),
            grid=(B, num_heads, Sq_pad // tq),
            in_specs=[pl.BlockSpec((1, tq, proj_dim), lambda b, h, qi: (b, qi, h)),
                      pl.BlockSpec((1, Sk, proj_dim), lambda b, h, qi: (b, 0, h))],
            out_specs=pl.BlockSpec((1, 1, tq, Sk), lambda b, h, qi: (b, h, qi, 0)),
            compiler_params=pltpu.CompilerParams(
                dimension_semantics=("parallel", "parallel", "parallel"),
                vmem_limit_bytes=vmem_limit),
        )(q_proj, k_proj)
    else:
        kernel = functools.partial(_attn_kernel_all_heads,
                                   num_heads=num_heads, proj_dim=proj_dim)
        out = pl.pallas_call(
            kernel,
            out_shape=jax.ShapeDtypeStruct((B, num_heads, Sq_pad, Sk), out_dtype),
            grid=(B, Sq_pad // tq),
            in_specs=[pl.BlockSpec((1, tq, E), lambda b, qi: (b, qi, 0)),
                      pl.BlockSpec((1, Sk, E), lambda b, qi: (b, 0, 0))],
            out_specs=pl.BlockSpec((1, num_heads, tq, Sk),
                                   lambda b, qi: (b, 0, qi, 0)),
            compiler_params=pltpu.CompilerParams(
                dimension_semantics=("parallel", "parallel"),
                vmem_limit_bytes=vmem_limit),
        )(q_proj, k_proj)

    if Sq_pad != Sq:
        out = out[:, :, :Sq, :]
    return out


# ----------------------------------------------------------------------------
# Module wrapper (glue / parameter setup in plain JAX)
# ----------------------------------------------------------------------------
class SparseMultiHeadedAttention:
    """JAX/Pallas port of the torch module's forward (returns attn_weights)."""

    def __init__(self, embed_dim, num_heads=1, scale=1, key=None,
                 attn_dtype=jnp.float32):
        assert embed_dim % num_heads == 0
        self.embed_dim = embed_dim
        self.num_heads = num_heads
        self.projection_dim = embed_dim // num_heads
        self.scale = float(scale)
        self.attn_dtype = attn_dtype          # bf16 halves the HBM writeback
        self._vmem_limit = _vmem_limit_bytes()

        k1, k2 = jax.random.split(key)
        # xavier_uniform, gain = calculate_gain('linear') = 1
        bound_in = math.sqrt(6.0 / (embed_dim + 3 * embed_dim))
        self.input_weights = jax.random.uniform(
            k1, (3 * embed_dim, embed_dim), jnp.float32, -bound_in, bound_in)
        bound_out = math.sqrt(6.0 / (embed_dim + embed_dim))
        # Kept for parameter parity; the reference forward() never uses it
        # (it returns attn_weights only -> values/output projection are dead).
        self.output_projection_weight = jax.random.uniform(
            k2, (embed_dim, embed_dim), jnp.float32, -bound_out, bound_out)

    def __call__(self, queries, keys, values):
        # All torch branches use W[E:2E] for keys and W[2E:3E] for queries;
        # the values projection (W[0:E]) never reaches the returned weights.
        # TODO(synk): values projection / output_projection are intentionally
        # not computed — the reference forward() returns only attn_weights.
        E, H, P = self.embed_dim, self.num_heads, self.projection_dim
        W = self.input_weights
        w_k = W[E:2 * E]
        w_q = W[2 * E:3 * E] * self.scale     # fold the softmax scale into W_q

        B, Sq, _ = queries.shape
        Sk = keys.shape[1]

        if queries is keys:
            # Self-attention fast path: one fused matmul reads x once.
            x2d = queries.reshape(-1, E).astype(MATMUL_DTYPE)
            w_cat = jnp.concatenate([w_k.T, w_q.T], axis=1).astype(MATMUL_DTYPE)
            k2d, q2d = fused_qk_projection(x2d, w_cat, E, self._vmem_limit)
        else:
            k2d = linear_nobias(keys.reshape(-1, E).astype(MATMUL_DTYPE),
                                w_k.T.astype(MATMUL_DTYPE), self._vmem_limit)
            q2d = linear_nobias(queries.reshape(-1, E).astype(MATMUL_DTYPE),
                                w_q.T.astype(MATMUL_DTYPE), self._vmem_limit)

        q_proj = q2d.reshape(B, Sq, E)
        k_proj = k2d.reshape(keys.shape[0], Sk, E)
        attn = sparse_attention(q_proj, k_proj, H, P, self._vmem_limit,
                                out_dtype=self.attn_dtype)   # (B, H, Sq, Sk)
        return attn.reshape(B * H, Sq, Sk)


# ----------------------------------------------------------------------------
# Pure-JAX reference (sorted sparsemax, mirrors torch; same bf16 MXU rounding)
# ----------------------------------------------------------------------------
def _sparsemax_ref(x):
    z = x - jnp.max(x, axis=-1, keepdims=True)
    zs = -jnp.sort(-z, axis=-1)
    n = x.shape[-1]
    rng = jnp.arange(1, n + 1, dtype=x.dtype)
    csum = jnp.cumsum(zs, axis=-1)
    is_gt = (1.0 + rng * zs > csum).astype(x.dtype)
    k = jnp.max(is_gt * rng, axis=-1, keepdims=True)
    tau = (jnp.sum(is_gt * zs, axis=-1, keepdims=True) - 1.0) / k
    return jnp.maximum(z - tau, 0.0)


def _forward_ref(mod, queries, keys, values):
    E, H, P = mod.embed_dim, mod.num_heads, mod.projection_dim
    W = mod.input_weights
    w_k = W[E:2 * E]
    w_q = W[2 * E:3 * E] * mod.scale

    def proj(x, w):
        B, S, _ = x.shape
        y = jnp.dot(x.reshape(-1, E).astype(MATMUL_DTYPE),
                    w.T.astype(MATMUL_DTYPE),
                    preferred_element_type=jnp.float32).astype(MATMUL_DTYPE)
        return (y.reshape(B, S, H, P).transpose(0, 2, 1, 3)
                 .reshape(B * H, S, P))

    Q = proj(queries, w_q)
    K = proj(keys, w_k)
    logits = jnp.einsum('bqd,bkd->bqk', Q, K,
                        preferred_element_type=jnp.float32)
    return _sparsemax_ref(logits)


if __name__ == "__main__":
    key = jax.random.PRNGKey(0)
    kp, kx, ky, kp2, kx2 = jax.random.split(key, 5)

    # --- small config: in-kernel head unroll path (proj_dim % 128 != 0) -----
    B, S, E, H = 2, 8, 32, 2
    mod = SparseMultiHeadedAttention(E, num_heads=H, scale=1, key=kp)
    x = jax.random.normal(kx, (B, S, E), jnp.float32)

    out = jax.block_until_ready(mod(x, x, x))     # self-attn: fused Q/K proj
    ref = _forward_ref(mod, x, x, x)
    assert out.shape == (B * H, S, S), out.shape
    # bf16 MXU operands: allow ~one-bf16-ulp propagation vs the mirror.
    assert jnp.allclose(out, ref, atol=1e-2, rtol=0.0), "mismatch vs reference"
    # sparsemax rows sum to 1 (exact-tau refine, f32 elementwise math)
    assert jnp.allclose(jnp.sum(out, axis=-1), 1.0, atol=1e-3)

    y = jax.random.normal(ky, (B, S, E), jnp.float32)   # cross-attention path
    out2 = jax.block_until_ready(mod(x, y, y))
    ref2 = _forward_ref(mod, x, y, y)
    assert out2.shape == (B * H, S, S)
    assert jnp.allclose(out2, ref2, atol=1e-2, rtol=0.0)

    # --- per-head grid path (proj_dim == 128) --------------------------------
    B2, S2, E2, H2 = 1, 128, 256, 2
    mod2 = SparseMultiHeadedAttention(E2, num_heads=H2, scale=1, key=kp2)
    x2 = jax.random.normal(kx2, (B2, S2, E2), jnp.float32)
    out3 = jax.block_until_ready(mod2(x2, x2, x2))
    ref3 = _forward_ref(mod2, x2, x2, x2)
    assert out3.shape == (B2 * H2, S2, S2)
    assert jnp.allclose(out3, ref3, atol=2e-2, rtol=0.0)
    assert jnp.allclose(jnp.sum(out3, axis=-1), 1.0, atol=1e-3)

    print("KERNEL_OK")
</pallas_src>

<mosaic_0001>
module attributes {stable_mosaic.version = 11 : i64} {
  func.func @_fused_qk_proj_kernel(%arg0: i32, %arg1: i32, %arg2: memref<16x32xbf16, #tpu.memory_space<vmem>>, %arg3: memref<32x64xbf16, #tpu.memory_space<vmem>>, %arg4: memref<16x32xbf16, #tpu.memory_space<vmem>>, %arg5: memref<16x32xbf16, #tpu.memory_space<vmem>>, %arg6: memref<16x64xf32, #tpu.memory_space<vmem>>) attributes {dimension_semantics = [#tpu.dimension_semantics<parallel>, #tpu.dimension_semantics<arbitrary>], iteration_bounds = array<i64: 1, 1>, scalar_prefetch = 0 : i64, scratch_operands = 1 : i64, tpu.core_type = #tpu.core_type<tc>, window_params = [{transform_indices = @transform_0, window_bounds = array<i64: 16, 32>}, {transform_indices = @transform_1, window_bounds = array<i64: 32, 64>}, {transform_indices = @transform_2, window_bounds = array<i64: 16, 32>}, {transform_indices = @transform_3, window_bounds = array<i64: 16, 32>}]} {
    %c0_i32 = arith.constant 0 : i32
    %0 = arith.cmpi eq, %arg1, %c0_i32 : i32
    %1 = arith.extui %0 : i1 to i32
    %c0_i32_0 = arith.constant 0 : i32
    %2 = arith.cmpi ne, %1, %c0_i32_0 : i32
    scf.if %2 {
      %cst_10 = arith.constant 0.000000e+00 : f32
      %12 = vector.broadcast %cst_10 : f32 to vector<16x64xf32>
      %c0_11 = arith.constant 0 : index
      %c0_12 = arith.constant 0 : index
      %13 = vector.load %arg6[%c0_11, %c0_12] : memref<16x64xf32, #tpu.memory_space<vmem>>, vector<16x64xf32>
      tpu.vector_store %arg6[%c0_11, %c0_12], %12 {strides = array<i32>} : memref<16x64xf32, #tpu.memory_space<vmem>>, vector<16x64xf32>,
    } else {
    }
    %c0 = arith.constant 0 : index
    %c0_1 = arith.constant 0 : index
    %3 = vector.load %arg6[%c0, %c0_1] : memref<16x64xf32, #tpu.memory_space<vmem>>, vector<16x64xf32>
    %c0_2 = arith.constant 0 : index
    %c0_3 = arith.constant 0 : index
    %4 = vector.load %arg2[%c0_2, %c0_3] : memref<16x32xbf16, #tpu.memory_space<vmem>>, vector<16x32xbf16>
    %c0_4 = arith.constant 0 : index
    %c0_5 = arith.constant 0 : index
    %5 = vector.load %arg3[%c0_4, %c0_5] : memref<32x64xbf16, #tpu.memory_space<vmem>>, vector<32x64xbf16>
    %cst = arith.constant dense<0.000000e+00> : vector<16x64xf32>
    %6 = tpu.matmul %4, %5, %cst {dimension_numbers = #tpu.dot_dimension_numbers<[1], [0], [0], [1], [0, 0, 1, 1], [], []>} : vector<16x32xbf16>, vector<32x64xbf16>, vector<16x64xf32> -> vector<16x64xf32>
    %7 = arith.addf %3, %6 : vector<16x64xf32>
    %c0_6 = arith.constant 0 : index
    %c0_7 = arith.constant 0 : index
    %8 = vector.load %arg6[%c0_6, %c0_7] : memref<16x64xf32, #tpu.memory_space<vmem>>, vector<16x64xf32>
    tpu.vector_store %arg6[%c0_6, %c0_7], %7 {strides = array<i32>} : memref<16x64xf32, #tpu.memory_space<vmem>>, vector<16x64xf32>,
    %c0_i32_8 = arith.constant 0 : i32
    %9 = arith.cmpi eq, %arg1, %c0_i32_8 : i32
    %10 = arith.extui %9 : i1 to i32
    %c0_i32_9 = arith.constant 0 : i32
    %11 = arith.cmpi ne, %10, %c0_i32_9 : i32
    scf.if %11 {
      %c0_10 = arith.constant 0 : index
      %c0_11 = arith.constant 0 : index
      %12 = vector.load %arg6[%c0_10, %c0_11] : memref<16x64xf32, #tpu.memory_space<vmem>>, vector<16x64xf32>
      %13 = vector.extract_strided_slice %12 {offsets = [0, 0], sizes = [16, 32], strides = [1, 1]} : vector<16x64xf32> to vector<16x32xf32>
      %14 = arith.truncf %13 : vector<16x32xf32> to vector<16x32xbf16>
      %c0_12 = arith.constant 0 : index
      %c0_13 = arith.constant 0 : index
      %15 = vector.load %arg4[%c0_12, %c0_13] : memref<16x32xbf16, #tpu.memory_space<vmem>>, vector<16x32xbf16>
      tpu.vector_store %arg4[%c0_12, %c0_13], %14 {strides = array<i32>} : memref<16x32xbf16, #tpu.memory_space<vmem>>, vector<16x32xbf16>,
      %16 = vector.extract_strided_slice %12 {offsets = [0, 32], sizes = [16, 32], strides = [1, 1]} : vector<16x64xf32> to vector<16x32xf32>
      %17 = arith.truncf %16 : vector<16x32xf32> to vector<16x32xbf16>
      %c0_14 = arith.constant 0 : index
      %c0_15 = arith.constant 0 : index
      %18 = vector.load %arg5[%c0_14, %c0_15] : memref<16x32xbf16, #tpu.memory_space<vmem>>, vector<16x32xbf16>
      tpu.vector_store %arg5[%c0_14, %c0_15], %17 {strides = array<i32>} : memref<16x32xbf16, #tpu.memory_space<vmem>>, vector<16x32xbf16>,
    } else {
    }
    return
  }
  func.func @transform_0(%arg0: i32, %arg1: i32) -> (i32, i32) {
    %c0_i32 = arith.constant 0 : i32
    return %arg0, %arg1 : i32, i32
  }
  func.func @transform_1(%arg0: i32, %arg1: i32) -> (i32, i32) {
    %c0_i32 = arith.constant 0 : i32
    %c0_i32_0 = arith.constant 0 : i32
    return %arg1, %c0_i32 : i32, i32
  }
  func.func @transform_2(%arg0: i32, %arg1: i32) -> (i32, i32) {
    %c0_i32 = arith.constant 0 : i32
    %c0_i32_0 = arith.constant 0 : i32
    return %arg0, %c0_i32 : i32, i32
  }
  func.func @transform_3(%arg0: i32, %arg1: i32) -> (i32, i32) {
    %c0_i32 = arith.constant 0 : i32
    %c0_i32_0 = arith.constant 0 : i32
    return %arg0, %c0_i32 : i32, i32
  }
}

</mosaic_0001>

<bundles_post_ra>
// kernel: tpu_custom_call.1
= control target key start
LH: loop header
LB: loop body
LE: loop exit
PB: predicated region body
PF: predicated region fallthrough
CT: control target
= control target key end

     0   :  { %9 = vsyncpa [#allocation4], 0  ;;  %s408_s0 = inlined_call_operand.hbm [shape: bf16[16,32], index: 0, kind: input, shape index: {}]   ;;  %s409_s1 = inlined_call_operand.hbm [shape: bf16[32,64], index: 1, kind: input, shape index: {}]   ;;  %s410_s2 = inlined_call_operand.hbm [shape: bf16[16,32], index: 2, kind: output, shape index: {0}]   ;;  %s411_s3 = inlined_call_operand.hbm [shape: bf16[16,32], index: 3, kind: output, shape index: {1}]  }
   0x1   :  { %10 = vsyncpa [#allocation7], 0 }
   0x2   :  { %11 = vsyncpa [#allocation5], 0 }
   0x3   :  { %12 = vsyncpa [#allocation10], 0  ;;  %s311_s12 = smov [#allocation3]   ;;  %s215_s16 = scalar_lea.hbm %s408_s0, 128 }
   0x4   :  { %s18_s13 = sshll.u32 %s311_s12, 4  ;;  %p216_p0 = scmp.ne.s32.totalorder %s408_s0, %s215_s16  ;;  %s19_s13 = int_to_ptr.vmem [resolvable:$true] %s18_s13 }
   0x5   :  { %p219_p1 = scmp.lt.u32.totalorder %s215_s16, %s408_s0 }
   0x7   :  { %p221_p2 = pnand %p219_p1, %p216_p0 }
   0x9   :  { %224 = shalt.err (!%p221_p2)
}
   0xa   :  { %s225_s21 = scalar_lea.vmem %s19_s13, 128  ;;  %p230_p4 = scmp.lt.s32.totalorder %s19_s13, %s19_s13 }
   0xb   :  { %p226_p3 = scmp.ne.s32.totalorder %s19_s13, %s225_s21  ;;  %p231_p5 = scmp.lt.s32.totalorder %s225_s21, %s225_s21 }
   0xd   :  { %p232_p6 = por %p231_p5, %p230_p4 }
   0xf   :  { %p233_p7 = pnand %p232_p6, %p226_p3 }
  0x11   :  { %236 = shalt.err (!%p233_p7)
}
  0x12   :  { %s312_s22 = smov 64   ;;  %s313_s23 = smov 4  }
  0x13   :  { %24 = dma.hbm_to_vmem [thread:$0]  %s408_s0, 128, %s19_s13, [#allocation4], %s312_s22, %s312_s22, %s313_s23  }
  0x14   :  { %s314_s26 = smov [#allocation6]   ;;  %s237_s30 = scalar_lea.hbm %s409_s1, 256 }
  0x15   :  { %s30_s27 = sshll.u32 %s314_s26, 4  ;;  %p238_p8 = scmp.ne.s32.totalorder %s409_s1, %s237_s30  ;;  %s31_s27 = int_to_ptr.vmem [resolvable:$true] %s30_s27 }
  0x16   :  { %p241_p9 = scmp.lt.u32.totalorder %s237_s30, %s409_s1 }
  0x18   :  { %p243_p10 = pnand %p241_p9, %p238_p8 }
  0x1a   :  { %246 = shalt.err (!%p243_p10)
}
  0x1b   :  { %s247_s8 = scalar_lea.vmem %s31_s27, 256  ;;  %p252_p12 = scmp.lt.s32.totalorder %s31_s27, %s31_s27 }
  0x1c   :  { %p248_p11 = scmp.ne.s32.totalorder %s31_s27, %s247_s8  ;;  %p253_p13 = scmp.lt.s32.totalorder %s247_s8, %s247_s8 }
  0x1e   :  { %p254_p0 = por %p253_p13, %p252_p12 }
  0x20   :  { %p255_p1 = pnand %p254_p0, %p248_p11 }
  0x22   :  { %258 = shalt.err (!%p255_p1)
}
  0x23   :  { %36 = dma.hbm_to_vmem [thread:$0]  %s409_s1, 256, %s31_s27, [#allocation7], %s312_s22, %s312_s22, %s313_s23  }
  0x24   :  { %303 = dma.done.wait [#allocation4], 128  }
  0x25   :  { %304 = vsyncadd [#allocation4], 4294967168 }
  0x26   :  { %305 = dma.done.wait [#allocation7], 256  }
  0x27   :  { %306 = vsyncadd [#allocation7], 4294967040  ;;  %vm48_vm0 = vcmask 523264   ;;  %v315_v0 = vmov 0.0   ;;  %vm316_vm1 = vmmov 0   ;;  %v212_v1 = vld [vmem:[#allocation6] sm:$0xff]  }
  0x28   :  { %49 = vst.msk [vmem:[#allocation2] sm:$0xff] %vm48_vm0, %v315_v0  ;;  %50 = vst.msk [vmem:[#allocation2 + $0x8] sm:$0xff] %vm48_vm0, %v315_v0  ;;  %195 = vmatprep.subr.bf16.mxu0 %v315_v0  ;;  %199 = vmatprep.mubr.msk.bf16.mxu0 %vm316_vm1, %v315_v0  ;;  %v213_v2 = vld [vmem:[#allocation6 + $0x8] sm:$0xff]   ;;  %v214_v3 = vld [vmem:[#allocation3] sm:$0xff]   ;;  %vm76_vm2 = vcmask 261120   ;;  %vm139_vm3 = vcmask 257024  }
  0x29   :  { %196 = vmatpush3.bf16.msra.mxu0 %v212_v1  ;;  %s317_s1 = smov [#allocation8]   ;;  %s318_s11 = smov 96  }
  0x2a   :  { %197 = vmatprep.subr.bf16.mxu0 %v315_v0  ;;  %s155_s10 = sshll.u32 %s317_s1, 4  ;;  %s156_s10 = int_to_ptr.vmem [resolvable:$true] %s155_s10 }
  0x2b   :  { %s259_s12 = scalar_lea.vmem %s156_s10, 128  ;;  %p264_p3 = scmp.lt.s32.totalorder %s156_s10, %s156_s10 }
  0x2c   :  { %p260_p2 = scmp.ne.s32.totalorder %s156_s10, %s259_s12  ;;  %p265_p4 = scmp.lt.s32.totalorder %s259_s12, %s259_s12 }
  0x2d   :  { %198 = vmatpush3.bf16.msra.mxu0 %v213_v2 }
  0x2e   :  { %p266_p5 = por %p265_p4, %p264_p3 }
  0x2f   :  { %v51_v4 = vld [vmem:[#allocation2] sm:$0xff]  ;;  %v52_v6 = vld [vmem:[#allocation2 + $0x8] sm:$0xff] }
  0x30   :  { %200 = vmatmul.mubr.msk.bf16.vlgmr.msra.gmra.mrb[0].mxu0 %vm76_vm2, %v214_v3  ;;  %p267_p6 = pnand %p266_p5, %p260_p2 }
 0x103   :  { %v114_v5 = vpop.f32.mrb[0].mxu0 }
 0x104   :  { %v121_v7 = vadd.f32 %v114_v5, %v51_v4  ;;  %v201_v8 = vpop.f32.mrb[1].mxu0 }
 0x105   :  { %v117_v9 = vpop.f32.mrb[2].mxu0 }
 0x106   :  { %124 = vst.msk [vmem:[#allocation2] sm:$0xff] %vm48_vm0, %v121_v7  ;;  %v122_v10 = vadd.f32 %v117_v9, %v52_v6  ;;  %v202_v11 = vpop.f32.mrb[3].mxu0 }
 0x108   :  { %125 = vst.msk [vmem:[#allocation2 + $0x8] sm:$0xff] %vm48_vm0, %v122_v10 }
 0x10d   :  { %v129_v12 = vld [vmem:[#allocation2] sm:$0xff] }
 0x10e   :  { %v190_v13 = vpack.c.bf16 %v129_v12, %v129_v12 }
 0x10f   :  { %v130_v14 = vld [vmem:[#allocation2 + $0x8] sm:$0xff] }
 0x110   :  { %142 = vrot.lane.b32.xlu0 %v190_v13, %s318_s11  ;;  %v191_v15 = vpack.c.bf16 %v130_v14, %v130_v14  ;;  %140 = vst.msk [vmem:[#allocation8] sm:$0xf] %vm139_vm3, %v190_v13 }
 0x112   :  { %141 = vst.msk [vmem:[#allocation8 + $0x4] sm:$0xf] %vm139_vm3, %v191_v15 }
 0x113   :  { %270 = shalt.err (!%p267_p6)
}
 0x114   :  { %s271_s15 = scalar_lea.hbm %s410_s2, 128 }
 0x115   :  { %p272_p7 = scmp.ne.s32.totalorder %s410_s2, %s271_s15  ;;  %p275_p8 = scmp.lt.u32.totalorder %s271_s15, %s410_s2 }
 0x117   :  { %p277_p9 = pnand %p275_p8, %p272_p7 }
 0x119   :  { %280 = shalt.err (!%p277_p9)
}
 0x11a   :  { %161 = dma.vmem_to_hbm [thread:$0]  %s156_s10, 128, %s410_s2, [#allocation5], %s312_s22, %s312_s22, %s313_s23  }
 0x11b   :  { %144 = vrot.lane.b32.xlu0 %v191_v15, %s318_s11  ;;  %s319_s24 = smov [#allocation9]  }
 0x11c   :  { %s167_s25 = sshll.u32 %s319_s24, 4  ;;  %s168_s25 = int_to_ptr.vmem [resolvable:$true] %s167_s25 }
 0x11d   :  { %s281_s26 = scalar_lea.vmem %s168_s25, 128  ;;  %p286_p11 = scmp.lt.s32.totalorder %s168_s25, %s168_s25 }
 0x11e   :  { %p282_p10 = scmp.ne.s32.totalorder %s168_s25, %s281_s26  ;;  %p287_p12 = scmp.lt.s32.totalorder %s281_s26, %s281_s26 }
 0x120   :  { %p288_p13 = por %p287_p12, %p286_p11 }
 0x122   :  { %p289_p0 = pnand %p288_p13, %p282_p10 }
 0x182   :  { %v143_v16 = vpop.permute.xlu0 %142 }
 0x183   :  { %148 = vst.msk [vmem:[#allocation9] sm:$0xf] %vm139_vm3, %v143_v16 }
 0x18d   :  { %v145_v17 = vpop.permute.xlu0 %144 }
 0x18e   :  { %149 = vst.msk [vmem:[#allocation9 + $0x4] sm:$0xf] %vm139_vm3, %v145_v17 }
 0x18f   :  { %292 = shalt.err (!%p289_p0)
}
 0x190   :  { %s293_s2 = scalar_lea.hbm %s411_s3, 128 }
 0x191   :  { %p294_p1 = scmp.ne.s32.totalorder %s411_s3, %s293_s2  ;;  %p297_p2 = scmp.lt.u32.totalorder %s293_s2, %s411_s3 }
 0x193   :  { %p299_p3 = pnand %p297_p2, %p294_p1 }
 0x195   :  { %302 = shalt.err (!%p299_p3)
}
 0x196   :  { %173 = dma.vmem_to_hbm [thread:$0]  %s168_s25, 128, %s411_s3, [#allocation10], %s312_s22, %s312_s22, %s313_s23  }
 0x197   :  { %307 = dma.done.wait [#allocation5], 128  }
 0x198   :  { %308 = vsyncadd [#allocation5], 4294967168 }
 0x199   :  { %309 = dma.done.wait [#allocation10], 128  }
 0x19a   :  { %310 = vsyncadd [#allocation10], 4294967168 }
 0x19b   :  { %180 = vsyncpa [#allocation4], 1 }
 0x19c   :  { %181 = vsyncpa [#allocation7], 1 }
 0x19d   :  { %182 = vsyncpa [#allocation5], 1 }
 0x19e   :  { %183 = vsyncpa [#allocation10], 1 }

</bundles_post_ra>
